<compile_context>
chip_gen: v6e
topology: v6e:2x2x1
jax: 0.10.0
libtpu: 0.0.40
codegen_flags: <defaults>
</compile_context>

<pallas_src>
import functools
import math

import jax
import jax.numpy as jnp
from jax import lax
from jax.experimental import pallas as pl
from jax.experimental.pallas import tpu as pltpu


def _round_up(x, m):
    return ((x + m - 1) // m) * m


def _pos_embed_kernel(rimin_ref, rimax_ref, rjmin_ref, rjmax_ref,
                      r_row_ref, r_col_ref, rhs_ref, fill_ref, out_ref,
                      *, TI, TJ, JC, Veff, R, D):
    """One (batch, i-tile, j-tile) grid step.

    Scalar prefetch (SMEM):
      rimin/rimax: (B, nI) per-i-tile min/max of r
      rjmin/rjmax: (B, nJ) per-j-tile min/max of r
    VMEM inputs:
      r_row_ref: (1, TJ)  int32  r[j] for this tile's columns
      r_col_ref: (TI, 1)  int32  r[i] for this tile's rows
      rhs_ref:   (JC*Veff, 2*JC*D) bf16 block-diagonal [table_hi | table_lo]
      fill_ref:  (2, TJ*D) f32   [table[0] tiled, table[2R] tiled]
    Output:
      out_ref:   (TI, TJ*D) lane-dense block of the packed (B, L, L*D) output
    """
    b = pl.program_id(0)
    it = pl.program_id(1)
    jt = pl.program_id(2)

    NJD = TJ * D            # out block lane width
    KW = JC * Veff          # matmul K width (JC groups of Veff bins)
    NW = JC * D             # per-chunk output lane width

    # ---- clipped-tile fast path: whole tile maps to a single table row ----
    lo_fill = (rjmax_ref[b, jt] - rimin_ref[b, it]) <= -R   # all rel <= -R
    hi_fill = (rjmin_ref[b, jt] - rimax_ref[b, it]) >= R    # all rel >=  R

    @pl.when(lo_fill)
    def _():
        out_ref[...] = jnp.broadcast_to(fill_ref[0:1, :], (TI, NJD)).astype(out_ref.dtype)

    @pl.when(hi_fill)
    def _():
        out_ref[...] = jnp.broadcast_to(fill_ref[1:2, :], (TI, NJD)).astype(out_ref.dtype)

    @pl.when(jnp.logical_not(jnp.logical_or(lo_fill, hi_fill)))
    def _():
        row = r_row_ref[...]                     # (1, TJ)  r[j]
        col = r_col_ref[...]                     # (TI, 1)  r[i]
        rhs = rhs_ref[...]                       # (KW, 2*NW) bf16

        # Division-free lane -> (group, bin) maps, hoisted out of the loop.
        laneK = lax.broadcasted_iota(jnp.int32, (1, KW), 1)
        laneN = lax.broadcasted_iota(jnp.int32, (1, NW), 1)
        gmK = [laneK >= g * Veff for g in range(1, JC)]
        gmN = [laneN >= g * D for g in range(1, JC)]
        gK = jnp.zeros((1, KW), jnp.int32)
        for m in gmK:
            gK = gK + m.astype(jnp.int32)
        vK = laneK - gK * Veff                   # bin id of each lane in its group

        # Exact f32 value of table[2R] for the top (rel >= R) bin, tiled to NW.
        top_b = jnp.broadcast_to(fill_ref[1:2, 0:NW], (TI, NW)).astype(jnp.float32)

        # Static unrolled loop over j-chunks of JC columns (keeps intermediates
        # near vreg scale; the store target is always a 128-aligned lane slice).
        for ch in range(TJ // JC):
            base = ch * JC
            # Replicate the chunk's JC r[j] scalars across their lane groups.
            rowK = jnp.broadcast_to(row[:, base:base + 1], (1, KW))
            rowN = jnp.broadcast_to(row[:, base:base + 1], (1, NW))
            for g in range(1, JC):
                rg = row[:, base + g:base + g + 1]
                rowK = jnp.where(gmK[g - 1], jnp.broadcast_to(rg, (1, KW)), rowK)
                rowN = jnp.where(gmN[g - 1], jnp.broadcast_to(rg, (1, NW)), rowN)

            # Lower-clipped bin index; the top bin (rel >= R) never matches the
            # one-hot and is patched in exactly afterwards.
            binK = jnp.maximum(rowK - col, -R) + R                 # (TI, KW)
            onehot = (binK == vK).astype(jnp.bfloat16)             # 0/1, exact bf16
            mm = jnp.dot(onehot, rhs, preferred_element_type=jnp.float32)  # (TI, 2*NW)
            val = mm[:, :NW] + mm[:, NW:]                          # hi + lo split
            val = jnp.where(rowN - col >= R, top_b, val)           # exact top bin
            out_ref[:, base * D:(base + JC) * D] = val.astype(out_ref.dtype)


def _pos_embed_pallas(r_arr, embed_table, R, *, tile_i=256, tile_j=128):
    """Run the kernel for residue indices r_arr (B, L). Returns (B, L, L, D)."""
    r_arr = r_arr.astype(jnp.int32)
    B, L = r_arr.shape
    V, D = embed_table.shape
    assert V == 2 * R + 1, (V, R)
    Veff = 2 * R                       # bins handled by the matmul; bin 2R is peeled

    # j-group size: fill K (<=256) and N (<=256, with hi|lo doubling) of the MXU.
    JC = max(1, min(max(1, 256 // Veff), max(1, 128 // D)))
    lane_unit = 128 // math.gcd(D, 128)                  # TJ multiple -> TJ*D % 128 == 0
    tj_unit = (JC * lane_unit) // math.gcd(JC, lane_unit)
    tile_i = max(8, (tile_i // 8) * 8)
    tile_j = max(tj_unit, (tile_j // tj_unit) * tj_unit)

    TI = min(tile_i, _round_up(L, 8))
    TJ = min(tile_j, _round_up(L, tj_unit))
    nI = pl.cdiv(L, TI)
    nJ = pl.cdiv(L, TJ)
    LPi, LPj = nI * TI, nJ * TJ

    # Only the tiny (B, L) r vectors get padded; the big output stays exact-shaped
    # and ragged edge tiles rely on Pallas masked writeback.
    imax, imin = 2**31 - 1, -(2**31 - 1)
    r_col = jnp.pad(r_arr, ((0, 0), (0, LPi - L)))[:, :, None]      # (B, LPi, 1)
    r_row = jnp.pad(r_arr, ((0, 0), (0, LPj - L)))[:, None, :]      # (B, 1, LPj)

    # Per-tile min/max of r (pads use sentinels so they never win) for the
    # clipped-tile fast path.
    rimin = jnp.pad(r_arr, ((0, 0), (0, LPi - L)), constant_values=imax).reshape(B, nI, TI).min(-1)
    rimax = jnp.pad(r_arr, ((0, 0), (0, LPi - L)), constant_values=imin).reshape(B, nI, TI).max(-1)
    rjmin = jnp.pad(r_arr, ((0, 0), (0, LPj - L)), constant_values=imax).reshape(B, nJ, TJ).min(-1)
    rjmax = jnp.pad(r_arr, ((0, 0), (0, LPj - L)), constant_values=imin).reshape(B, nJ, TJ).max(-1)

    # Block-diagonal RHS: rhs[g*Veff + v, g*D + d] = hi[v, d] (cols 0..JC*D) and
    # lo[v, d] (cols JC*D..2*JC*D).  hi/lo are exactly bf16-representable, so the
    # one-hot matmul reproduces the f32 table rows to <= 2^-16 relative error.
    tbl_f32 = embed_table.astype(jnp.float32)
    main = tbl_f32[:Veff]
    hi = main.astype(jnp.bfloat16).astype(jnp.float32)
    lo = main - hi
    eye = jnp.eye(JC, dtype=jnp.float32)
    rhs = jnp.concatenate([jnp.kron(eye, hi), jnp.kron(eye, lo)], axis=1).astype(jnp.bfloat16)

    # Exact f32 fill rows: table[0] (rel <= -R) and table[2R] (rel >= R), tiled
    # across TJ columns (row 1's first JC*D lanes double as the top-bin patch).
    fill = jnp.stack([jnp.tile(tbl_f32[0], TJ),
                      jnp.tile(tbl_f32[Veff], TJ)]).astype(jnp.float32)   # (2, TJ*D)

    kernel = functools.partial(_pos_embed_kernel, TI=TI, TJ=TJ, JC=JC,
                               Veff=Veff, R=R, D=D)

    itemsize = jnp.dtype(embed_table.dtype).itemsize
    out_block_bytes = TI * TJ * D * itemsize
    # Sized from the actual tile footprint (double-buffered output + headroom).
    vmem_limit = int(min(100 * 2**20, 2 * out_block_bytes + 24 * 2**20))

    flops = 2 * B * LPi * LPj * Veff * 2 * D
    bytes_accessed = B * L * L * D * itemsize + 8 * B * (LPi + LPj) + rhs.size * 2 + fill.size * 4

    out_packed = pl.pallas_call(
        kernel,
        out_shape=jax.ShapeDtypeStruct((B, L, L * D), embed_table.dtype),
        grid_spec=pltpu.PrefetchScalarGridSpec(
            num_scalar_prefetch=4,
            grid=(B, nI, nJ),
            in_specs=[
                # r as rows (r[j]) and cols (r[i]); no in-kernel transpose.
                pl.BlockSpec((None, 1, TJ), lambda b, i, j, *_: (b, 0, j)),
                pl.BlockSpec((None, TI, 1), lambda b, i, j, *_: (b, i, 0)),
                # Small constant operands, resident across the whole grid.
                pl.BlockSpec((JC * Veff, 2 * JC * D), lambda b, i, j, *_: (0, 0)),
                pl.BlockSpec((2, TJ * D), lambda b, i, j, *_: (0, 0)),
            ],
            out_specs=pl.BlockSpec((None, TI, TJ * D), lambda b, i, j, *_: (b, i, j)),
        ),
        compiler_params=pltpu.CompilerParams(
            dimension_semantics=("parallel", "parallel", "parallel"),
            vmem_limit_bytes=vmem_limit,
        ),
        cost_estimate=pl.CostEstimate(flops=int(flops), transcendentals=0,
                                      bytes_accessed=int(bytes_accessed)),
    )(rimin, rimax, rjmin, rjmax, r_row, r_col, rhs, fill)

    return out_packed.reshape(B, L, L, D)


def af2_positional_embedding(x, embed_table, *, pos_embed_r=32,
                             dim_order="transformer", r=None,
                             tile_i=256, tile_j=128):
    """JAX/Pallas port of AF2_PositionalEmbedding.forward -> (B, L, L, D)."""
    if dim_order == "transformer":
        l_idx, b_idx = 0, 1
    elif dim_order == "trajectory":
        l_idx, b_idx = 1, 0
    else:
        raise KeyError(dim_order)

    V, D = embed_table.shape
    assert V == 2 * pos_embed_r + 1

    if r is None:
        # All batch rows identical (arange binning): compute once.
        # NOTE: jnp.broadcast_to materializes B copies in HBM only if this is a
        # jit output; consumers that fuse the broadcast pay nothing extra.
        L = x.shape[l_idx]
        B = x.shape[b_idx]
        r_arr = jnp.arange(L, dtype=jnp.int32)[None, :]
        out1 = _pos_embed_pallas(r_arr, embed_table, pos_embed_r,
                                 tile_i=tile_i, tile_j=tile_j)
        return jnp.broadcast_to(out1, (B, L, L, D))

    # NOTE: the reference feeds integer residue indices (nn.Embedding needs
    # integer indices); non-integer r would be truncated by this cast.
    return _pos_embed_pallas(r.astype(jnp.int32), embed_table, pos_embed_r,
                             tile_i=tile_i, tile_j=tile_j)


if __name__ == "__main__":
    key = jax.random.PRNGKey(0)
    k_x, k_tbl, k_r, k_r2 = jax.random.split(key, 4)

    R = 32
    V = 2 * R + 1
    D = 32
    TOL = 5e-4   # hi/lo bf16 split: relative error <= 2^-16 of the table values

    # Deterministic nn.Embedding(2R+1, D) weight stand-in.
    embed_table = jax.random.normal(k_tbl, (V, D), dtype=jnp.float32)

    def ref_embed(r_bl):
        idx = jnp.clip(r_bl[:, None, :] - r_bl[:, :, None], -R, R) + R
        return embed_table[idx]

    # ---- path 1: small shapes, r = None (broadcast fast path) --------------
    L, B = 8, 2
    x = jax.random.normal(k_x, (L, B, 3), dtype=jnp.float32)   # 'transformer'
    out = jax.block_until_ready(
        af2_positional_embedding(x, embed_table, pos_embed_r=R, r=None))
    ref = jnp.broadcast_to(ref_embed(jnp.arange(L, dtype=jnp.int32)[None]), (B, L, L, D))
    assert out.shape == (B, L, L, D)
    assert jnp.allclose(out, ref, atol=TOL), "mismatch (r=None path)"

    # ---- path 2: explicit r, single tile, exercises both clip bins ----------
    r_in = jax.random.randint(k_r, (B, L), 0, 100, dtype=jnp.int32)
    out_r = jax.block_until_ready(
        af2_positional_embedding(x, embed_table, pos_embed_r=R, r=r_in))
    assert out_r.shape == (B, L, L, D)
    assert jnp.allclose(out_r, ref_embed(r_in), atol=TOL), "mismatch (r given path)"

    # ---- path 3: L = 200 -> ragged j-tile, masked edge writeback ------------
    L2, B2 = 200, 1
    x2 = jnp.zeros((L2, B2, 3), dtype=jnp.float32)
    r2 = jax.random.randint(k_r2, (B2, L2), 0, 300, dtype=jnp.int32)
    out2 = jax.block_until_ready(
        af2_positional_embedding(x2, embed_table, pos_embed_r=R, r=r2))
    assert out2.shape == (B2, L2, L2, D)
    assert jnp.allclose(out2, ref_embed(r2), atol=TOL), "mismatch (ragged/masked path)"

    # ---- path 4: widely spaced r -> clipped-tile fast-fill path -------------
    L3, B3 = 256, 1
    x3 = jnp.zeros((L3, B3, 3), dtype=jnp.float32)
    r3 = (jnp.arange(L3, dtype=jnp.int32) * 32)[None, :]
    out3 = jax.block_until_ready(
        af2_positional_embedding(x3, embed_table, pos_embed_r=R, r=r3,
                                 tile_i=128, tile_j=128))
    assert out3.shape == (B3, L3, L3, D)
    assert jnp.allclose(out3, ref_embed(r3), atol=TOL), "mismatch (fast-fill path)"

    print("KERNEL_OK")
</pallas_src>

<mosaic_0001>
module attributes {stable_mosaic.version = 11 : i64} {
  func.func @_pos_embed_kernel(%arg0: i32, %arg1: i32, %arg2: i32, %arg3: memref<1x1xi32, #tpu.memory_space<smem>>, %arg4: memref<1x1xi32, #tpu.memory_space<smem>>, %arg5: memref<1x1xi32, #tpu.memory_space<smem>>, %arg6: memref<1x1xi32, #tpu.memory_space<smem>>, %arg7: memref<1x1x8xi32, #tpu.memory_space<vmem>>, %arg8: memref<1x8x1xi32, #tpu.memory_space<vmem>>, %arg9: memref<256x256xbf16, #tpu.memory_space<vmem>>, %arg10: memref<2x256xf32, #tpu.memory_space<vmem>>, %arg11: memref<1x8x256xf32, #tpu.memory_space<vmem>>) attributes {dimension_semantics = [#tpu.dimension_semantics<parallel>, #tpu.dimension_semantics<parallel>, #tpu.dimension_semantics<parallel>], iteration_bounds = array<i64: 1, 1, 1>, scalar_prefetch = 4 : i64, scratch_operands = 0 : i64, tpu.core_type = #tpu.core_type<tc>, window_params = [{transform_indices = @transform_0, window_bounds = array<i64: 1, 1, 8>}, {transform_indices = @transform_1, window_bounds = array<i64: 1, 8, 1>}, {pipeline_mode = #tpu.pipeline_mode<synchronous>, transform_indices = @transform_2, window_bounds = array<i64: 256, 256>}, {pipeline_mode = #tpu.pipeline_mode<synchronous>, transform_indices = @transform_3, window_bounds = array<i64: 2, 256>}, {transform_indices = @transform_4, window_bounds = array<i64: 1, 8, 256>}]} {
    %0 = arith.index_cast %arg0 : i32 to index
    %1 = arith.index_cast %arg2 : i32 to index
    %2 = memref.load %arg6[%0, %1] : memref<1x1xi32, #tpu.memory_space<smem>>
    %3 = arith.index_cast %arg0 : i32 to index
    %4 = arith.index_cast %arg1 : i32 to index
    %5 = memref.load %arg3[%3, %4] : memref<1x1xi32, #tpu.memory_space<smem>>
    %6 = arith.subi %2, %5 : i32
    %c-32_i32 = arith.constant -32 : i32
    %7 = arith.cmpi sle, %6, %c-32_i32 : i32
    %8 = arith.index_cast %arg0 : i32 to index
    %9 = arith.index_cast %arg2 : i32 to index
    %10 = memref.load %arg5[%8, %9] : memref<1x1xi32, #tpu.memory_space<smem>>
    %11 = arith.index_cast %arg0 : i32 to index
    %12 = arith.index_cast %arg1 : i32 to index
    %13 = memref.load %arg4[%11, %12] : memref<1x1xi32, #tpu.memory_space<smem>>
    %14 = arith.subi %10, %13 : i32
    %c32_i32 = arith.constant 32 : i32
    %15 = arith.cmpi sge, %14, %c32_i32 : i32
    %16 = arith.extui %7 : i1 to i32
    %c0_i32 = arith.constant 0 : i32
    %17 = arith.cmpi ne, %16, %c0_i32 : i32
    scf.if %17 {
      %c0 = arith.constant 0 : index
      %c0_2 = arith.constant 0 : index
      %24 = vector.load %arg10[%c0, %c0_2] : memref<2x256xf32, #tpu.memory_space<vmem>>, vector<1x256xf32>
      %25 = vector.shape_cast %24 : vector<1x256xf32> to vector<1x256xf32>
      %26 = vector.broadcast %25 : vector<1x256xf32> to vector<8x256xf32>
      %c0_3 = arith.constant 0 : index
      %c0_4 = arith.constant 0 : index
      %c0_5 = arith.constant 0 : index
      %27 = vector.load %arg11[%c0_3, %c0_4, %c0_5] : memref<1x8x256xf32, #tpu.memory_space<vmem>>, vector<1x8x256xf32>
      %28 = vector.shape_cast %27 : vector<1x8x256xf32> to vector<8x256xf32>
      %29 = vector.shape_cast %26 : vector<8x256xf32> to vector<1x8x256xf32>
      tpu.vector_store %arg11[%c0_3, %c0_4, %c0_5], %29 {strides = array<i32>} : memref<1x8x256xf32, #tpu.memory_space<vmem>>, vector<1x8x256xf32>,
    } else {
    }
    %18 = arith.extui %15 : i1 to i32
    %c0_i32_0 = arith.constant 0 : i32
    %19 = arith.cmpi ne, %18, %c0_i32_0 : i32
    scf.if %19 {
      %c1 = arith.constant 1 : index
      %c0 = arith.constant 0 : index
      %24 = vector.load %arg10[%c1, %c0] : memref<2x256xf32, #tpu.memory_space<vmem>>, vector<1x256xf32>
      %25 = vector.shape_cast %24 : vector<1x256xf32> to vector<1x256xf32>
      %26 = vector.broadcast %25 : vector<1x256xf32> to vector<8x256xf32>
      %c0_2 = arith.constant 0 : index
      %c0_3 = arith.constant 0 : index
      %c0_4 = arith.constant 0 : index
      %27 = vector.load %arg11[%c0_2, %c0_3, %c0_4] : memref<1x8x256xf32, #tpu.memory_space<vmem>>, vector<1x8x256xf32>
      %28 = vector.shape_cast %27 : vector<1x8x256xf32> to vector<8x256xf32>
      %29 = vector.shape_cast %26 : vector<8x256xf32> to vector<1x8x256xf32>
      tpu.vector_store %arg11[%c0_2, %c0_3, %c0_4], %29 {strides = array<i32>} : memref<1x8x256xf32, #tpu.memory_space<vmem>>, vector<1x8x256xf32>,
    } else {
    }
    %20 = arith.ori %7, %15 : i1
    %true = arith.constant true
    %21 = arith.xori %20, %true : i1
    %22 = arith.extui %21 : i1 to i32
    %c0_i32_1 = arith.constant 0 : i32
    %23 = arith.cmpi ne, %22, %c0_i32_1 : i32
    scf.if %23 {
      %c0 = arith.constant 0 : index
      %c0_2 = arith.constant 0 : index
      %c0_3 = arith.constant 0 : index
      %24 = vector.load %arg7[%c0, %c0_2, %c0_3] : memref<1x1x8xi32, #tpu.memory_space<vmem>>, vector<1x1x8xi32>
      %25 = vector.shape_cast %24 : vector<1x1x8xi32> to vector<1x8xi32>
      %c0_4 = arith.constant 0 : index
      %c0_5 = arith.constant 0 : index
      %c0_6 = arith.constant 0 : index
      %26 = vector.load %arg8[%c0_4, %c0_5, %c0_6] : memref<1x8x1xi32, #tpu.memory_space<vmem>>, vector<1x8x1xi32>
      %27 = vector.shape_cast %26 : vector<1x8x1xi32> to vector<8x1xi32>
      %c0_7 = arith.constant 0 : index
      %c0_8 = arith.constant 0 : index
      %28 = vector.load %arg9[%c0_7, %c0_8] : memref<256x256xbf16, #tpu.memory_space<vmem>>, vector<256x256xbf16>
      %29 = tpu.iota {dimensions = array<i32: 1>} : vector<1x256xi32>
      %30 = tpu.iota {dimensions = array<i32: 1>} : vector<1x128xi32>
      %c64_i32 = arith.constant 64 : i32
      %31 = vector.broadcast %c64_i32 : i32 to vector<1x256xi32>
      %32 = arith.cmpi sge, %29, %31 : vector<1x256xi32>
      %c128_i32 = arith.constant 128 : i32
      %33 = vector.broadcast %c128_i32 : i32 to vector<1x256xi32>
      %34 = arith.cmpi sge, %29, %33 : vector<1x256xi32>
      %c192_i32 = arith.constant 192 : i32
      %35 = vector.broadcast %c192_i32 : i32 to vector<1x256xi32>
      %36 = arith.cmpi sge, %29, %35 : vector<1x256xi32>
      %c32_i32_9 = arith.constant 32 : i32
      %37 = vector.broadcast %c32_i32_9 : i32 to vector<1x128xi32>
      %38 = arith.cmpi sge, %30, %37 : vector<1x128xi32>
      %c64_i32_10 = arith.constant 64 : i32
      %39 = vector.broadcast %c64_i32_10 : i32 to vector<1x128xi32>
      %40 = arith.cmpi sge, %30, %39 : vector<1x128xi32>
      %c96_i32 = arith.constant 96 : i32
      %41 = vector.broadcast %c96_i32 : i32 to vector<1x128xi32>
      %42 = arith.cmpi sge, %30, %41 : vector<1x128xi32>
      %c0_i32_11 = arith.constant 0 : i32
      %43 = vector.broadcast %c0_i32_11 : i32 to vector<1x256xi32>
      %44 = arith.extui %32 : vector<1x256xi1> to vector<1x256xi32>
      %45 = arith.addi %43, %44 : vector<1x256xi32>
      %46 = arith.extui %34 : vector<1x256xi1> to vector<1x256xi32>
      %47 = arith.addi %45, %46 : vector<1x256xi32>
      %48 = arith.extui %36 : vector<1x256xi1> to vector<1x256xi32>
      %49 = arith.addi %47, %48 : vector<1x256xi32>
      %c64_i32_12 = arith.constant 64 : i32
      %50 = vector.broadcast %c64_i32_12 : i32 to vector<1x256xi32>
      %51 = arith.muli %49, %50 : vector<1x256xi32>
      %52 = arith.subi %29, %51 : vector<1x256xi32>
      %c1 = arith.constant 1 : index
      %c0_13 = arith.constant 0 : index
      %53 = vector.load %arg10[%c1, %c0_13] : memref<2x256xf32, #tpu.memory_space<vmem>>, vector<1x128xf32>
      %54 = vector.shape_cast %53 : vector<1x128xf32> to vector<1x128xf32>
      %55 = vector.broadcast %54 : vector<1x128xf32> to vector<8x128xf32>
      %56 = vector.extract_strided_slice %25 {offsets = [0, 0], sizes = [1, 1], strides = [1, 1]} : vector<1x8xi32> to vector<1x1xi32>
      %57 = vector.shape_cast %56 : vector<1x1xi32> to vector<1x1xi32>
      %58 = vector.broadcast %57 : vector<1x1xi32> to vector<1x256xi32>
      %59 = vector.extract_strided_slice %25 {offsets = [0, 0], sizes = [1, 1], strides = [1, 1]} : vector<1x8xi32> to vector<1x1xi32>
      %60 = vector.shape_cast %59 : vector<1x1xi32> to vector<1x1xi32>
      %61 = vector.broadcast %60 : vector<1x1xi32> to vector<1x128xi32>
      %62 = vector.extract_strided_slice %25 {offsets = [0, 1], sizes = [1, 1], strides = [1, 1]} : vector<1x8xi32> to vector<1x1xi32>
      %63 = vector.shape_cast %62 : vector<1x1xi32> to vector<1x1xi32>
      %64 = vector.broadcast %63 : vector<1x1xi32> to vector<1x256xi32>
      %65 = arith.select %32, %64, %58 : vector<1x256xi1>, vector<1x256xi32>
      %66 = vector.shape_cast %62 : vector<1x1xi32> to vector<1x1xi32>
      %67 = vector.broadcast %66 : vector<1x1xi32> to vector<1x128xi32>
      %68 = arith.select %38, %67, %61 : vector<1x128xi1>, vector<1x128xi32>
      %69 = vector.extract_strided_slice %25 {offsets = [0, 2], sizes = [1, 1], strides = [1, 1]} : vector<1x8xi32> to vector<1x1xi32>
      %70 = vector.shape_cast %69 : vector<1x1xi32> to vector<1x1xi32>
      %71 = vector.broadcast %70 : vector<1x1xi32> to vector<1x256xi32>
      %72 = arith.select %34, %71, %65 : vector<1x256xi1>, vector<1x256xi32>
      %73 = vector.shape_cast %69 : vector<1x1xi32> to vector<1x1xi32>
      %74 = vector.broadcast %73 : vector<1x1xi32> to vector<1x128xi32>
      %75 = arith.select %40, %74, %68 : vector<1x128xi1>, vector<1x128xi32>
      %76 = vector.extract_strided_slice %25 {offsets = [0, 3], sizes = [1, 1], strides = [1, 1]} : vector<1x8xi32> to vector<1x1xi32>
      %77 = vector.shape_cast %76 : vector<1x1xi32> to vector<1x1xi32>
      %78 = vector.broadcast %77 : vector<1x1xi32> to vector<1x256xi32>
      %79 = arith.select %36, %78, %72 : vector<1x256xi1>, vector<1x256xi32>
      %80 = vector.shape_cast %76 : vector<1x1xi32> to vector<1x1xi32>
      %81 = vector.broadcast %80 : vector<1x1xi32> to vector<1x128xi32>
      %82 = arith.select %42, %81, %75 : vector<1x128xi1>, vector<1x128xi32>
      %83 = vector.broadcast %79 : vector<1x256xi32> to vector<8x256xi32>
      %84 = vector.broadcast %27 : vector<8x1xi32> to vector<8x256xi32>
      %85 = arith.subi %83, %84 : vector<8x256xi32>
      %c-32_i32_14 = arith.constant -32 : i32
      %86 = vector.broadcast %c-32_i32_14 : i32 to vector<8x256xi32>
      %87 = arith.maxsi %85, %86 : vector<8x256xi32>
      %c32_i32_15 = arith.constant 32 : i32
      %88 = vector.broadcast %c32_i32_15 : i32 to vector<8x256xi32>
      %89 = arith.addi %87, %88 : vector<8x256xi32>
      %90 = vector.broadcast %52 : vector<1x256xi32> to vector<8x256xi32>
      %91 = arith.cmpi eq, %89, %90 : vector<8x256xi32>
      %92 = arith.extui %91 : vector<8x256xi1> to vector<8x256xi32>
      %93 = arith.sitofp %92 : vector<8x256xi32> to vector<8x256xf32>
      %94 = arith.truncf %93 : vector<8x256xf32> to vector<8x256xbf16>
      %cst = arith.constant dense<0.000000e+00> : vector<8x256xf32>
      %95 = tpu.matmul %94, %28, %cst {dimension_numbers = #tpu.dot_dimension_numbers<[1], [0], [0], [1], [0, 0, 1, 1], [], []>} : vector<8x256xbf16>, vector<256x256xbf16>, vector<8x256xf32> -> vector<8x256xf32>
      %96 = vector.extract_strided_slice %95 {offsets = [0, 0], sizes = [8, 128], strides = [1, 1]} : vector<8x256xf32> to vector<8x128xf32>
      %97 = vector.extract_strided_slice %95 {offsets = [0, 128], sizes = [8, 128], strides = [1, 1]} : vector<8x256xf32> to vector<8x128xf32>
      %98 = arith.addf %96, %97 : vector<8x128xf32>
      %99 = vector.broadcast %82 : vector<1x128xi32> to vector<8x128xi32>
      %100 = vector.broadcast %27 : vector<8x1xi32> to vector<8x128xi32>
      %101 = arith.subi %99, %100 : vector<8x128xi32>
      %c32_i32_16 = arith.constant 32 : i32
      %102 = vector.broadcast %c32_i32_16 : i32 to vector<8x128xi32>
      %103 = arith.cmpi sge, %101, %102 : vector<8x128xi32>
      %104 = arith.select %103, %55, %98 : vector<8x128xi1>, vector<8x128xf32>
      %c0_17 = arith.constant 0 : index
      %c0_18 = arith.constant 0 : index
      %c0_19 = arith.constant 0 : index
      %105 = vector.load %arg11[%c0_17, %c0_18, %c0_19] : memref<1x8x256xf32, #tpu.memory_space<vmem>>, vector<1x8x128xf32>
      %106 = vector.shape_cast %105 : vector<1x8x128xf32> to vector<8x128xf32>
      %107 = vector.shape_cast %104 : vector<8x128xf32> to vector<1x8x128xf32>
      tpu.vector_store %arg11[%c0_17, %c0_18, %c0_19], %107 {strides = array<i32>} : memref<1x8x256xf32, #tpu.memory_space<vmem>>, vector<1x8x128xf32>,
      %108 = vector.extract_strided_slice %25 {offsets = [0, 4], sizes = [1, 1], strides = [1, 1]} : vector<1x8xi32> to vector<1x1xi32>
      %109 = vector.shape_cast %108 : vector<1x1xi32> to vector<1x1xi32>
      %110 = vector.broadcast %109 : vector<1x1xi32> to vector<1x256xi32>
      %111 = vector.extract_strided_slice %25 {offsets = [0, 4], sizes = [1, 1], strides = [1, 1]} : vector<1x8xi32> to vector<1x1xi32>
      %112 = vector.shape_cast %111 : vector<1x1xi32> to vector<1x1xi32>
      %113 = vector.broadcast %112 : vector<1x1xi32> to vector<1x128xi32>
      %114 = vector.extract_strided_slice %25 {offsets = [0, 5], sizes = [1, 1], strides = [1, 1]} : vector<1x8xi32> to vector<1x1xi32>
      %115 = vector.shape_cast %114 : vector<1x1xi32> to vector<1x1xi32>
      %116 = vector.broadcast %115 : vector<1x1xi32> to vector<1x256xi32>
      %117 = arith.select %32, %116, %110 : vector<1x256xi1>, vector<1x256xi32>
      %118 = vector.shape_cast %114 : vector<1x1xi32> to vector<1x1xi32>
      %119 = vector.broadcast %118 : vector<1x1xi32> to vector<1x128xi32>
      %120 = arith.select %38, %119, %113 : vector<1x128xi1>, vector<1x128xi32>
      %121 = vector.extract_strided_slice %25 {offsets = [0, 6], sizes = [1, 1], strides = [1, 1]} : vector<1x8xi32> to vector<1x1xi32>
      %122 = vector.shape_cast %121 : vector<1x1xi32> to vector<1x1xi32>
      %123 = vector.broadcast %122 : vector<1x1xi32> to vector<1x256xi32>
      %124 = arith.select %34, %123, %117 : vector<1x256xi1>, vector<1x256xi32>
      %125 = vector.shape_cast %121 : vector<1x1xi32> to vector<1x1xi32>
      %126 = vector.broadcast %125 : vector<1x1xi32> to vector<1x128xi32>
      %127 = arith.select %40, %126, %120 : vector<1x128xi1>, vector<1x128xi32>
      %128 = vector.extract_strided_slice %25 {offsets = [0, 7], sizes = [1, 1], strides = [1, 1]} : vector<1x8xi32> to vector<1x1xi32>
      %129 = vector.shape_cast %128 : vector<1x1xi32> to vector<1x1xi32>
      %130 = vector.broadcast %129 : vector<1x1xi32> to vector<1x256xi32>
      %131 = arith.select %36, %130, %124 : vector<1x256xi1>, vector<1x256xi32>
      %132 = vector.shape_cast %128 : vector<1x1xi32> to vector<1x1xi32>
      %133 = vector.broadcast %132 : vector<1x1xi32> to vector<1x128xi32>
      %134 = arith.select %42, %133, %127 : vector<1x128xi1>, vector<1x128xi32>
      %135 = vector.broadcast %131 : vector<1x256xi32> to vector<8x256xi32>
      %136 = vector.broadcast %27 : vector<8x1xi32> to vector<8x256xi32>
      %137 = arith.subi %135, %136 : vector<8x256xi32>
      %c-32_i32_20 = arith.constant -32 : i32
      %138 = vector.broadcast %c-32_i32_20 : i32 to vector<8x256xi32>
      %139 = arith.maxsi %137, %138 : vector<8x256xi32>
      %c32_i32_21 = arith.constant 32 : i32
      %140 = vector.broadcast %c32_i32_21 : i32 to vector<8x256xi32>
      %141 = arith.addi %139, %140 : vector<8x256xi32>
      %142 = vector.broadcast %52 : vector<1x256xi32> to vector<8x256xi32>
      %143 = arith.cmpi eq, %141, %142 : vector<8x256xi32>
      %144 = arith.extui %143 : vector<8x256xi1> to vector<8x256xi32>
      %145 = arith.sitofp %144 : vector<8x256xi32> to vector<8x256xf32>
      %146 = arith.truncf %145 : vector<8x256xf32> to vector<8x256xbf16>
      %cst_22 = arith.constant dense<0.000000e+00> : vector<8x256xf32>
      %147 = tpu.matmul %146, %28, %cst_22 {dimension_numbers = #tpu.dot_dimension_numbers<[1], [0], [0], [1], [0, 0, 1, 1], [], []>} : vector<8x256xbf16>, vector<256x256xbf16>, vector<8x256xf32> -> vector<8x256xf32>
      %148 = vector.extract_strided_slice %147 {offsets = [0, 0], sizes = [8, 128], strides = [1, 1]} : vector<8x256xf32> to vector<8x128xf32>
      %149 = vector.extract_strided_slice %147 {offsets = [0, 128], sizes = [8, 128], strides = [1, 1]} : vector<8x256xf32> to vector<8x128xf32>
      %150 = arith.addf %148, %149 : vector<8x128xf32>
      %151 = vector.broadcast %134 : vector<1x128xi32> to vector<8x128xi32>
      %152 = vector.broadcast %27 : vector<8x1xi32> to vector<8x128xi32>
      %153 = arith.subi %151, %152 : vector<8x128xi32>
      %c32_i32_23 = arith.constant 32 : i32
      %154 = vector.broadcast %c32_i32_23 : i32 to vector<8x128xi32>
      %155 = arith.cmpi sge, %153, %154 : vector<8x128xi32>
      %156 = arith.select %155, %55, %150 : vector<8x128xi1>, vector<8x128xf32>
      %c0_24 = arith.constant 0 : index
      %c0_25 = arith.constant 0 : index
      %c128 = arith.constant 128 : index
      %157 = vector.load %arg11[%c0_24, %c0_25, %c128] : memref<1x8x256xf32, #tpu.memory_space<vmem>>, vector<1x8x128xf32>
      %158 = vector.shape_cast %157 : vector<1x8x128xf32> to vector<8x128xf32>
      %159 = vector.shape_cast %156 : vector<8x128xf32> to vector<1x8x128xf32>
      tpu.vector_store %arg11[%c0_24, %c0_25, %c128], %159 {strides = array<i32>} : memref<1x8x256xf32, #tpu.memory_space<vmem>>, vector<1x8x128xf32>,
    } else {
    }
    return
  }
  func.func @transform_0(%arg0: i32, %arg1: i32, %arg2: i32, %arg3: memref<1x1xi32, #tpu.memory_space<smem>>, %arg4: memref<1x1xi32, #tpu.memory_space<smem>>, %arg5: memref<1x1xi32, #tpu.memory_space<smem>>, %arg6: memref<1x1xi32, #tpu.memory_space<smem>>) -> (i32, i32, i32) {
    %c0_i32 = arith.constant 0 : i32
    %c0_i32_0 = arith.constant 0 : i32
    return %arg0, %c0_i32, %arg2 : i32, i32, i32
  }
  func.func @transform_1(%arg0: i32, %arg1: i32, %arg2: i32, %arg3: memref<1x1xi32, #tpu.memory_space<smem>>, %arg4: memref<1x1xi32, #tpu.memory_space<smem>>, %arg5: memref<1x1xi32, #tpu.memory_space<smem>>, %arg6: memref<1x1xi32, #tpu.memory_space<smem>>) -> (i32, i32, i32) {
    %c0_i32 = arith.constant 0 : i32
    %c0_i32_0 = arith.constant 0 : i32
    return %arg0, %arg1, %c0_i32 : i32, i32, i32
  }
  func.func @transform_2(%arg0: i32, %arg1: i32, %arg2: i32, %arg3: memref<1x1xi32, #tpu.memory_space<smem>>, %arg4: memref<1x1xi32, #tpu.memory_space<smem>>, %arg5: memref<1x1xi32, #tpu.memory_space<smem>>, %arg6: memref<1x1xi32, #tpu.memory_space<smem>>) -> (i32, i32) {
    %c0_i32 = arith.constant 0 : i32
    %c0_i32_0 = arith.constant 0 : i32
    %c0_i32_1 = arith.constant 0 : i32
    return %c0_i32, %c0_i32_0 : i32, i32
  }
  func.func @transform_3(%arg0: i32, %arg1: i32, %arg2: i32, %arg3: memref<1x1xi32, #tpu.memory_space<smem>>, %arg4: memref<1x1xi32, #tpu.memory_space<smem>>, %arg5: memref<1x1xi32, #tpu.memory_space<smem>>, %arg6: memref<1x1xi32, #tpu.memory_space<smem>>) -> (i32, i32) {
    %c0_i32 = arith.constant 0 : i32
    %c0_i32_0 = arith.constant 0 : i32
    %c0_i32_1 = arith.constant 0 : i32
    return %c0_i32, %c0_i32_0 : i32, i32
  }
  func.func @transform_4(%arg0: i32, %arg1: i32, %arg2: i32, %arg3: memref<1x1xi32, #tpu.memory_space<smem>>, %arg4: memref<1x1xi32, #tpu.memory_space<smem>>, %arg5: memref<1x1xi32, #tpu.memory_space<smem>>, %arg6: memref<1x1xi32, #tpu.memory_space<smem>>) -> (i32, i32, i32) {
    %c0_i32 = arith.constant 0 : i32
    return %arg0, %arg1, %arg2 : i32, i32, i32
  }
}

</mosaic_0001>

<bundles_post_ra>
// kernel: tpu_custom_call.1
= control target key start
LH: loop header
LB: loop body
LE: loop exit
PB: predicated region body
PF: predicated region fallthrough
CT: control target
= control target key end

     0   :  { %17 = vsyncpa [#allocation8], 0  ;;  %s821_s0 = inlined_call_operand.<no memory space> [shape: s32[1,1], index: 0, kind: input, shape index: {}]   ;;  %s822_s1 = inlined_call_operand.<no memory space> [shape: s32[1,1], index: 1, kind: input, shape index: {}]   ;;  %s823_s2 = inlined_call_operand.<no memory space> [shape: s32[1,1], index: 2, kind: input, shape index: {}]   ;;  %s824_s3 = inlined_call_operand.<no memory space> [shape: s32[1,1], index: 3, kind: input, shape index: {}]   ;;  %s825_s4 = inlined_call_operand.vmem [shape: s32[1,1,8], index: 4, kind: input, shape index: {}]   ;;  %s826_s5 = inlined_call_operand.vmem [shape: s32[1,8,1], index: 5, kind: input, shape index: {}]   ;;  %s827_s6 = inlined_call_operand.hbm [shape: bf16[256,256], index: 6, kind: input, shape index: {}]   ;;  %s828_s7 = inlined_call_operand.vmem [shape: f32[2,256], index: 7, kind: input, shape index: {}]   ;;  %s829_s8 = inlined_call_operand.hbm [shape: f32[1,8,256], index: 8, kind: output, shape index: {}]  }
   0x1   :  { %18 = vsyncpa [#allocation9], 0  ;;  %s696_s27 = smov [#allocation7]  }
   0x2   :  { %s28_s28 = sshll.u32 %s696_s27, 4  ;;  %s29_s28 = int_to_ptr.vmem [resolvable:$true] %s28_s28 }
   0x3   :  { %s660_s29 = scalar_lea.vmem %s29_s28, 4096  ;;  %p665_p1 = scmp.lt.s32.totalorder %s29_s28, %s29_s28 }
   0x4   :  { %p661_p0 = scmp.ne.s32.totalorder %s29_s28, %s660_s29  ;;  %p666_p2 = scmp.lt.s32.totalorder %s660_s29, %s660_s29 }
   0x6   :  { %p667_p3 = por %p666_p2, %p665_p1 }
   0x8   :  { %p668_p4 = pnand %p667_p3, %p661_p0 }
   0xa   :  { %671 = shalt.err (!%p668_p4)
}
   0xb   :  { %s697_s30 = smov 128   ;;  %s698_s9 = smov 8  }
   0xc   :  { %34 = dma.hbm_to_vmem [thread:$0]  %s827_s6, 4096, %s29_s28, [#allocation8], %s697_s30, %s697_s30, %s698_s9  }
   0xd   :  { %692 = dma.done.wait [#allocation8], 4096  }
   0xe   :  { %693 = vsyncadd [#allocation8], 4294963200  ;;  %s48_s16 = ssub.s32 %s824_s3, %s821_s0  ;;  %s52_s21 = ssub.s32 %s823_s2, %s822_s1 }
   0xf   :  { %p49_p5 = scmp.le.s32.totalorder %s48_s16, 4294967264  ;;  %p53_p6 = scmp.ge.s32.totalorder %s52_s21, 32 }
  0x10   :  { %p533_p7 = scmp.gt.s32.totalorder %s48_s16, 4294967264 }
  0x12   :  { %56 = sbr.rel (%p533_p7) target bundleno = 32 (0x20), region = 25 }
  0x17   :  { %v59_v0 = vlaneseq  ;;  %v57_v2 = vld [vmem:[%s828_s7] ss:$2 sm:$0x3] }
  0x19   :  { %v60_v1 = vshrl.u32 %v59_v0, 7 }
  0x1b   :  { %v61_v3 = vsub.s32 0, %v60_v1  ;;  %v65_v4 = vsub.s32 1, %v60_v1 }
  0x1d   :  { %v62_v5 = vrot.slane %v57_v2, %v61_v3  ;;  %v66_v6 = vrot.slane %v57_v2, %v65_v4 }
  0x1f   :  { %69 = vst [vmem:[#allocation10] sm:$0xff] %v62_v5  ;;  %70 = vst [vmem:[#allocation10 + $0x8] sm:$0xff] %v66_v6 }
  0x20 PF:  { %p534_p8 = scmp.lt.s32.totalorder %s52_s21, 32 }
  0x22   :  { %73 = sbr.rel (%p534_p8) target bundleno = 48 (0x30), region = 29 }
  0x27   :  { %v77_v7 = vlaneseq  ;;  %v535_v9 = vld [vmem:[%s828_s7 + $0x1] ss:$2 sm:$0x3] }
  0x29   :  { %v78_v8 = vshrl.u32 %v77_v7, 7 }
  0x2b   :  { %v79_v10 = vsub.s32 0, %v78_v8  ;;  %v83_v11 = vsub.s32 1, %v78_v8 }
  0x2d   :  { %v80_v12 = vrot.slane %v535_v9, %v79_v10  ;;  %v84_v13 = vrot.slane %v535_v9, %v83_v11 }
  0x2f   :  { %87 = vst [vmem:[#allocation10] sm:$0xff] %v80_v12  ;;  %88 = vst [vmem:[#allocation10 + $0x8] sm:$0xff] %v84_v13 }
  0x30 PF:  { %p89_p9 = por %p53_p6, %p49_p5 }
  0x32   :  { %92 = sbr.rel (%p89_p9) target bundleno = 411 (0x19b), region = 33 }
  0x37   :  { %v93_v14 = vld [vmem:[%s825_s4] sm:$0x1]  ;;  %v699_v15 = vmov 6   ;;  %v700_v16 = vmov 2   ;;  %v604_v17 = vld [vmem:[#allocation7 + $0x74] ss:$8 sps:$4 sm:$0xff]   ;;  %v127_v56 = vlaneseq }
  0x38   :  { %596 = vset.pattern.permute.xlu1 %v699_v15  ;;  %594 = vset.pattern.permute.xlu0 %v700_v16  ;;  %v606_v18 = vld [vmem:[#allocation7 + $0x70] ss:$8 sps:$4 sm:$0xff]   ;;  %v607_v19 = vld [vmem:[#allocation7 + $0x64] ss:$8 sps:$4 sm:$0xff]   ;;  %v609_v20 = vld [vmem:[#allocation7 + $0x60] ss:$8 sps:$4 sm:$0xff]  }
  0x39   :  { %437 = vperm.xlu1 %596, %v93_v14   ;;  %175 = vperm.xlu0 %594, %v93_v14   ;;  %v701_v21 = vmov 7   ;;  %v702_v22 = vmov 3   ;;  %v610_v23 = vld [vmem:[#allocation7 + $0x54] ss:$8 sps:$4 sm:$0xff]   ;;  %v612_v24 = vld [vmem:[#allocation7 + $0x50] ss:$8 sps:$4 sm:$0xff]  }
  0x3a   :  { %373 = vmatprep.subr.bf16.mxu0 %v604_v17  ;;  %472 = vmatprep.subr.bf16.mxu1 %v604_v17  ;;  %v613_v25 = vld [vmem:[#allocation7 + $0x44] ss:$8 sps:$4 sm:$0xff]   ;;  %v703_v26 = vmov 0   ;;  %v704_v27 = vmov 1   ;;  %v615_v29 = vld [vmem:[#allocation7 + $0x40] ss:$8 sps:$4 sm:$0xff]  }
  0x3b   :  { %374 = vmatpush1.bf16.msra.mxu0 %v606_v18  ;;  %473 = vmatpush1.bf16.msra.mxu1 %v606_v18  ;;  %v94_v28 = vld [vmem:[%s826_s5] sm:$0xff]  ;;  %v616_v30 = vld [vmem:[#allocation7 + $0x34] ss:$8 sps:$4 sm:$0xff]   ;;  %v705_v31 = vmov 4   ;;  %v618_v32 = vld [vmem:[#allocation7 + $0x30] ss:$8 sps:$4 sm:$0xff]  }
  0x3c   :  { %375 = vmatprep.subr.bf16.mxu0 %v607_v19  ;;  %474 = vmatprep.subr.bf16.mxu1 %v607_v19  ;;  %v619_v33 = vld [vmem:[#allocation7 + $0x24] ss:$8 sps:$4 sm:$0xff]   ;;  %v706_v34 = vmov 5   ;;  %v621_v35 = vld [vmem:[#allocation7 + $0x20] ss:$8 sps:$4 sm:$0xff]   ;;  %v785_v57 = vand.u32 127, %v127_v56 }
  0x3d   :  { %597 = vset.pattern.permute.xlu1 %v701_v21  ;;  %595 = vset.pattern.permute.xlu0 %v702_v22  ;;  %v622_v36 = vld [vmem:[#allocation7 + $0x14] ss:$8 sps:$4 sm:$0xff]   ;;  %v624_v37 = vld [vmem:[#allocation7 + $0x10] ss:$8 sps:$4 sm:$0xff]   ;;  %v625_v38 = vld [vmem:[#allocation7 + $0x4] ss:$8 sps:$4 sm:$0xff]  }
  0x3e   :  { %447 = vperm.xlu1 %597, %v93_v14   ;;  %185 = vperm.xlu0 %595, %v93_v14   ;;  %v627_v39 = vld [vmem:[#allocation7] ss:$8 sps:$4 sm:$0xff]   ;;  %v628_v40 = vld [vmem:[#allocation7 + $0xf4] ss:$8 sps:$4 sm:$0xff]   ;;  %v630_v41 = vld [vmem:[#allocation7 + $0xf0] ss:$8 sps:$4 sm:$0xff]  }
  0x3f   :  { %376 = vmatpush1.bf16.msra.mxu0 %v609_v20  ;;  %475 = vmatpush1.bf16.msra.mxu1 %v609_v20  ;;  %v631_v42 = vld [vmem:[#allocation7 + $0xe4] ss:$8 sps:$4 sm:$0xff]   ;;  %v633_v43 = vld [vmem:[#allocation7 + $0xe0] ss:$8 sps:$4 sm:$0xff]   ;;  %v634_v44 = vld [vmem:[#allocation7 + $0xd4] ss:$8 sps:$4 sm:$0xff]  }
  0x40   :  { %377 = vmatprep.subr.bf16.mxu0 %v610_v23  ;;  %476 = vmatprep.subr.bf16.mxu1 %v610_v23  ;;  %v636_v45 = vld [vmem:[#allocation7 + $0xd0] ss:$8 sps:$4 sm:$0xff]   ;;  %v637_v46 = vld [vmem:[#allocation7 + $0xc4] ss:$8 sps:$4 sm:$0xff]   ;;  %v639_v47 = vld [vmem:[#allocation7 + $0xc0] ss:$8 sps:$4 sm:$0xff]  }
  0x41   :  { %v640_v48 = vld [vmem:[#allocation7 + $0xb4] ss:$8 sps:$4 sm:$0xff]   ;;  %v642_v49 = vld [vmem:[#allocation7 + $0xb0] ss:$8 sps:$4 sm:$0xff]   ;;  %v643_v50 = vld [vmem:[#allocation7 + $0xa4] ss:$8 sps:$4 sm:$0xff]  }
  0x42   :  { %598 = vset.pattern.permute.xlu1 %v703_v26  ;;  %599 = vset.pattern.permute.xlu0 %v704_v27  ;;  %v645_v51 = vld [vmem:[#allocation7 + $0xa0] ss:$8 sps:$4 sm:$0xff]   ;;  %v646_v52 = vld [vmem:[#allocation7 + $0x94] ss:$8 sps:$4 sm:$0xff]   ;;  %v648_v53 = vld [vmem:[#allocation7 + $0x90] ss:$8 sps:$4 sm:$0xff]  }
  0x43   :  { %158 = vperm.xlu1 %598, %v93_v14   ;;  %165 = vperm.xlu0 %599, %v93_v14   ;;  %v649_v54 = vld [vmem:[#allocation7 + $0x84] ss:$8 sps:$4 sm:$0xff]   ;;  %v651_v55 = vld [vmem:[#allocation7 + $0x80] ss:$8 sps:$4 sm:$0xff]   ;;  %v129_v60 = vadd.s32 128, %v785_v57  ;;  %v161_v61 = vshrl.u32 %v127_v56, 7 }
  0x44   :  { %378 = vmatpush1.bf16.msra.mxu0 %v612_v24  ;;  %477 = vmatpush1.bf16.msra.mxu1 %v612_v24  ;;  %vm130_vm1 = vcmp.ge.s32.totalorder %v785_v57, 64  ;;  %vm136_vm2 = vcmp.ge.s32.totalorder %v785_v57, 32  ;;  %vm137_vm3 = vcmp.ge.s32.totalorder %v785_v57, 96 }
  0x45   :  { %379 = vmatprep.subr.bf16.mxu0 %v613_v25  ;;  %478 = vmatprep.subr.bf16.mxu1 %v613_v25  ;;  %vm135_vm0 = vcmp.ge.s32.totalorder %v129_v60, 192  ;;  %v162_v1 = vsub.s32 0, %v161_v61  ;;  %v138_v3 = vsel %vm130_vm1, 1, %v703_v26 }
  0x46   :  { %v145_v0 = vsel %vm135_vm0, 1, %v703_v26  ;;  %v148_v15 = vmul.u32 64, %v138_v3 }
  0x47   :  { %600 = vset.pattern.permute.xlu1 %v705_v31  ;;  %602 = vset.pattern.permute.xlu0 %v703_v26  ;;  %v147_v2 = vadd.s32 2, %v145_v0 }
  0x48   :  { %420 = vperm.xlu1 %600, %v93_v14   ;;  %195 = vperm.xlu0 %602, %v94_v28   ;;  %v150_v27 = vsub.s32 %v785_v57, %v148_v15 }
  0x49   :  { %380 = vmatpush1.bf16.msra.mxu0 %v615_v29  ;;  %479 = vmatpush1.bf16.msra.mxu1 %v615_v29  ;;  %v149_v13 = vmul.u32 64, %v147_v2 }
  0x4a   :  { %381 = vmatprep.subr.bf16.mxu0 %v616_v30  ;;  %480 = vmatprep.subr.bf16.mxu1 %v616_v30 }
  0x4b   :  { %v151_v25 = vsub.s32 %v129_v60, %v149_v13 }
  0x4c   :  { %601 = vset.pattern.permute.xlu1 %v706_v34  ;;  %603 = vset.pattern.permute.xlu0 %v701_v21 }
  0x4d   :  { %427 = vperm.xlu1 %601, %v93_v14   ;;  %382 = vmatpush1.bf16.msra.mxu0 %v618_v32 }
  0x4e   :  { %383 = vmatprep.subr.bf16.mxu0 %v619_v33  ;;  %481 = vmatpush1.bf16.msra.mxu1 %v618_v32 }
  0x4f   :  { %482 = vmatprep.subr.bf16.mxu1 %v619_v33 }
  0x51   :  { %384 = vmatpush1.bf16.msra.mxu0 %v621_v35 }
  0x52   :  { %385 = vmatprep.subr.bf16.mxu0 %v622_v36  ;;  %483 = vmatpush1.bf16.msra.mxu1 %v621_v35 }
  0x53   :  { %484 = vmatprep.subr.bf16.mxu1 %v622_v36 }
  0x55   :  { %386 = vmatpush1.bf16.msra.mxu0 %v624_v37 }
  0x56   :  { %387 = vmatprep.subr.bf16.mxu0 %v625_v38  ;;  %485 = vmatpush1.bf16.msra.mxu1 %v624_v37 }
  0x57   :  { %486 = vmatprep.subr.bf16.mxu1 %v625_v38 }
  0x59   :  { %388 = vmatpush1.bf16.msra.mxu0 %v627_v39 }
  0x5a   :  { %389 = vmatprep.subr.bf16.mxu0 %v628_v40  ;;  %487 = vmatpush1.bf16.msra.mxu1 %v627_v39 }
  0x5b   :  { %488 = vmatprep.subr.bf16.mxu1 %v628_v40 }
  0x5d   :  { %390 = vmatpush2.bf16.msra.mxu0 %v630_v41 }
  0x5e   :  { %391 = vmatprep.subr.bf16.mxu0 %v631_v42  ;;  %489 = vmatpush2.bf16.msra.mxu1 %v630_v41  ;;  %v707_v41 = vmov 1.0|1.0  }
  0x5f   :  { %490 = vmatprep.subr.bf16.mxu1 %v631_v42 }
  0x61   :  { %392 = vmatpush2.bf16.msra.mxu0 %v633_v43 }
  0x62   :  { %393 = vmatprep.subr.bf16.mxu0 %v634_v44  ;;  %491 = vmatpush2.bf16.msra.mxu1 %v633_v43 }
  0x63   :  { %492 = vmatprep.subr.bf16.mxu1 %v634_v44 }
  0x65   :  { %394 = vmatpush2.bf16.msra.mxu0 %v636_v45 }
  0x66   :  { %395 = vmatprep.subr.bf16.mxu0 %v637_v46  ;;  %493 = vmatpush2.bf16.msra.mxu1 %v636_v45 }
  0x67   :  { %494 = vmatprep.subr.bf16.mxu1 %v637_v46 }
  0x69   :  { %396 = vmatpush2.bf16.msra.mxu0 %v639_v47 }
  0x6a   :  { %397 = vmatprep.subr.bf16.mxu0 %v640_v48  ;;  %495 = vmatpush2.bf16.msra.mxu1 %v639_v47  ;;  %v536_v47 = vld [vmem:[%s828_s7 + $0x1] ss:$0 sm:$0xff] }
  0x6b   :  { %496 = vmatprep.subr.bf16.mxu1 %v640_v48 }
  0x6d   :  { %398 = vmatpush2.bf16.msra.mxu0 %v642_v49 }
  0x6e   :  { %399 = vmatprep.subr.bf16.mxu0 %v643_v50  ;;  %497 = vmatpush2.bf16.msra.mxu1 %v642_v49 }
  0x6f   :  { %498 = vmatprep.subr.bf16.mxu1 %v643_v50 }
  0x71   :  { %400 = vmatpush2.bf16.msra.mxu0 %v645_v51 }
  0x72   :  { %401 = vmatprep.subr.bf16.mxu0 %v646_v52  ;;  %499 = vmatpush2.bf16.msra.mxu1 %v645_v51 }
  0x73   :  { %500 = vmatprep.subr.bf16.mxu1 %v646_v52 }
  0x75   :  { %402 = vmatpush2.bf16.msra.mxu0 %v648_v53 }
  0x76   :  { %403 = vmatprep.subr.bf16.mxu0 %v649_v54  ;;  %501 = vmatpush2.bf16.msra.mxu1 %v648_v53 }
  0x77   :  { %502 = vmatprep.subr.bf16.mxu1 %v649_v54 }
  0x79   :  { %404 = vmatpush2.bf16.msra.mxu0 %v651_v55 }
  0x7a   :  { %503 = vmatpush2.bf16.msra.mxu1 %v651_v55 }
  0xb4   :  { %v438_v58 = vpop.permute.xlu1 %437  ;;  %v176_v59 = vpop.permute.xlu0 %175 }
  0xb5   :  { %v180_v4 = vrot.slane %v176_v59, %v162_v1  ;;  %v442_v11 = vrot.slane %v438_v58, %v162_v1 }
  0xb9   :  { %v448_v62 = vpop.permute.xlu1 %447  ;;  %v186_v63 = vpop.permute.xlu0 %185 }
  0xba   :  { %v452_v7 = vrot.slane %v448_v62, %v162_v1  ;;  %v190_v8 = vrot.slane %v186_v63, %v162_v1 }
  0xbc   :  { %v192_v19 = vsel %vm135_vm0, %v190_v8, %v180_v4  ;;  %v454_v20 = vsel %vm135_vm0, %v452_v7, %v442_v11 }
  0xbe   :  { %v159_v5 = vpop.permute.xlu1 %158  ;;  %v166_v6 = vpop.permute.xlu0 %165 }
  0xbf   :  { %v163_v9 = vrot.slane %v159_v5, %v162_v1  ;;  %v170_v10 = vrot.slane %v166_v6, %v162_v1 }
  0xc1   :  { %v173_v12 = vsel %vm136_vm2, %v170_v10, %v163_v9  ;;  %v171_v16 = vsel %vm130_vm1, %v170_v10, %v163_v9 }
  0xc2   :  { %v183_v14 = vsel %vm130_vm1, %v180_v4, %v173_v12 }
  0xc3   :  { %v421_v17 = vpop.permute.xlu1 %420  ;;  %v196_v18 = vpop.permute.xlu0 %195  ;;  %v193_v21 = vsel %vm137_vm3, %v190_v8, %v183_v14 }
  0xc4   :  { %v198_v22 = vsub.s32 %v192_v19, %v196_v18  ;;  %v457_v23 = vsub.s32 %v454_v20, %v196_v18  ;;  %v197_v24 = vsub.s32 %v171_v16, %v196_v18  ;;  %v415_v26 = vsub.s32 %v193_v21, %v196_v18 }
  0xc5   :  { %v425_v35 = vrot.slane %v421_v17, %v162_v1 }
  0xc6   :  { %vm201_vm4 = vcmp.gt.s32.totalorder %v198_v22, 4294967264  ;;  %vm460_vm5 = vcmp.gt.s32.totalorder %v457_v23, 4294967264  ;;  %vm199_vm6 = vcmp.gt.s32.totalorder %v197_v24, 4294967264  ;;  %vm416_vm0 = vcmp.ge.s32.totalorder %v415_v26, 32 }
  0xc7   :  { %v202_v28 = vsel %vm201_vm4, %v198_v22, 4294967264  ;;  %v461_v29 = vsel %vm460_vm5, %v457_v23, 4294967264  ;;  %v200_v30 = vsel %vm199_vm6, %v197_v24, 4294967264 }
  0xc8   :  { %v428_v31 = vpop.permute.xlu1 %427  ;;  %v204_v32 = vadd.s32 32, %v202_v28  ;;  %v463_v33 = vadd.s32 32, %v461_v29  ;;  %v203_v34 = vadd.s32 32, %v200_v30 }
  0xc9   :  { %v432_v36 = vrot.slane %v428_v31, %v162_v1 }
  0xca   :  { %vm206_vm7 = vcmp.eq.s32.totalorder %v204_v32, %v151_v25  ;;  %vm465_vm8 = vcmp.eq.s32.totalorder %v463_v33, %v151_v25  ;;  %vm205_vm9 = vcmp.eq.s32.totalorder %v203_v34, %v150_v27 }
  0xcb   :  { %v433_v37 = vsel %vm130_vm1, %v432_v36, %v425_v35  ;;  %v435_v38 = vsel %vm136_vm2, %v432_v36, %v425_v35  ;;  %vm571_vm10 = vmpackc.low %vm206_vm7, %vm206_vm7 }
  0xcc   :  { %v445_v39 = vsel %vm130_vm1, %v442_v11, %v435_v38  ;;  %v456_v40 = vsub.s32 %v433_v37, %v196_v18  ;;  %572 = vmatprep.mubr.msk.bf16.mxu0 %vm571_vm10, %v707_v41  ;;  %vm577_vm11 = vmpackc.low %vm465_vm8, %vm465_vm8 }
  0xcd   :  { %578 = vmatprep.mubr.msk.bf16.mxu1 %vm577_vm11, %v707_v41  ;;  %vm573_vm12 = vmpackc.low %vm205_vm9, %vm205_vm9  ;;  %v455_v42 = vsel %vm137_vm3, %v452_v7, %v445_v39 }
  0xce   :  { %574 = vmatmul.mubr.msk.bf16.vlgmr.msra.gmra.mxu0 %vm573_vm12, %v707_v41  ;;  %vm458_vm13 = vcmp.gt.s32.totalorder %v456_v40, 4294967264  ;;  %v514_v43 = vsub.s32 %v455_v42, %v196_v18 }
  0xcf   :  { %v459_v44 = vsel %vm458_vm13, %v456_v40, 4294967264 }
  0xd0   :  { %v462_v45 = vadd.s32 32, %v459_v44  ;;  %vm515_vm1 = vcmp.ge.s32.totalorder %v514_v43, 32 }
  0xd2   :  { %vm464_vm14 = vcmp.eq.s32.totalorder %v462_v45, %v150_v27 }
  0xd3   :  { %vm579_vm15 = vmpackc.low %vm464_vm14, %vm464_vm14 }
  0xd4   :  { %580 = vmatmul.mubr.msk.bf16.vlgmr.msra.gmra.mxu1 %vm579_vm15, %v707_v41 }
 0x18e   :  { %v407_v46 = vpop.f32.mrf.mxu0 }
 0x190   :  { %v409_v48 = vpop.f32.mrf.mxu0 }
 0x191   :  { %v414_v49 = vadd.f32 %v409_v48, %v407_v46 }
 0x192   :  { %v411_v50 = vpop.f32.mrf.mxu0 }
 0x193   :  { %v417_v51 = vsel %vm416_vm0, %v536_v47, %v414_v49 }
 0x194   :  { %418 = vst [vmem:[#allocation10] sm:$0xff] %v417_v51  ;;  %v412_v52 = vpop.f32.mrf.mxu0  ;;  %v506_v53 = vpop.f32.mrf.mxu1 }
 0x196   :  { %v508_v54 = vpop.f32.mrf.mxu1 }
 0x197   :  { %v513_v55 = vadd.f32 %v508_v54, %v506_v53 }
 0x198   :  { %v510_v56 = vpop.f32.mrf.mxu1 }
 0x199   :  { %v516_v57 = vsel %vm515_vm1, %v536_v47, %v513_v55 }
 0x19a   :  { %517 = vst [vmem:[#allocation10 + $0x8] sm:$0xff] %v516_v57  ;;  %v511_v58 = vpop.f32.mrf.mxu1 }
 0x19b PF:  { %s708_s25 = smov [#allocation10]  }
 0x19c   :  { %s524_s26 = sshll.u32 %s708_s25, 4  ;;  %s525_s26 = int_to_ptr.vmem [resolvable:$true] %s524_s26 }
 0x19d   :  { %s672_s7 = scalar_lea.vmem %s525_s26, 256  ;;  %p677_p11 = scmp.lt.s32.totalorder %s525_s26, %s525_s26 }
 0x19e   :  { %p673_p10 = scmp.ne.s32.totalorder %s525_s26, %s672_s7  ;;  %p678_p12 = scmp.lt.s32.totalorder %s672_s7, %s672_s7 }
 0x1a0   :  { %p679_p13 = por %p678_p12, %p677_p11 }
 0x1a2   :  { %p680_p0 = pnand %p679_p13, %p673_p10 }
 0x1a4   :  { %683 = shalt.err (!%p680_p0)
}
 0x1a5   :  { %527 = dma.vmem_to_hbm [thread:$0]  %s525_s26, 256, %s829_s8, [#allocation9]  }
 0x1a6   :  { %694 = dma.done.wait [#allocation9], 256  }
 0x1a7   :  { %695 = vsyncadd [#allocation9], 4294967040 }
 0x1a8   :  { %531 = vsyncpa [#allocation8], 1 }
 0x1a9   :  { %532 = vsyncpa [#allocation9], 1 }

</bundles_post_ra>
